<compile_context>
chip_gen: v7x
topology: tpu7x:2x2x1
jax: 0.10.0
libtpu: 0.0.40
codegen_flags: <defaults>
</compile_context>

<pallas_src>
import jax
import jax.numpy as jnp
from jax.experimental import pallas as pl
from jax.experimental.pallas import tpu as pltpu  # noqa: F401  (TPU backend)

BN_EPS = 1e-5
FC1_UNITS = 256
FC2_UNITS = 256


def critic_kernel(xs_ref, w1_ref, w2_ref, vec_ref, out_ref):
    # Packed per-feature vectors: rows of the (8, 256) slab.
    b1 = vec_ref[0:1, :]          # (1, 256)
    gamma = vec_ref[1:2, :]       # (1, 256)
    beta = vec_ref[2:3, :]        # (1, 256)
    b2 = vec_ref[3:4, :]          # (1, 256)
    w3r = vec_ref[4:5, :]         # (1, 256)   fc3 weight as a row
    b3 = vec_ref[5:6, 0:1]        # (1, 1)     fc3 bias

    # --- fc1 + ReLU: single K=32 bf16 matmul, f32 accumulate ---------------
    xs_bf = xs_ref[...].astype(jnp.bfloat16)                   # (B, 32)
    h1 = jnp.dot(xs_bf, w1_ref[...], preferred_element_type=jnp.float32)
    h1 = h1 + b1                                               # (B, 256)
    h1 = jnp.maximum(h1, 0.0)

    # --- BatchNorm1d (training mode, batch statistics), folded -------------
    # One-pass stats with non-negative clamp (guards rsqrt against f32
    # cancellation); single scale/shift per element.
    mean = jnp.mean(h1, axis=0, keepdims=True)                 # (1, 256)
    meansq = jnp.mean(h1 * h1, axis=0, keepdims=True)          # (1, 256)
    var = jnp.maximum(meansq - mean * mean, 0.0)
    inv_std = jax.lax.rsqrt(var + BN_EPS)
    scale = inv_std * gamma                                    # (1, 256)
    shift = beta - mean * scale                                # (1, 256)
    h1 = h1 * scale + shift

    # --- fc2 + ReLU ---------------------------------------------------------
    h2 = jnp.dot(h1.astype(jnp.bfloat16), w2_ref[...],
                 preferred_element_type=jnp.float32)
    h2 = h2 + b2
    h2 = jnp.maximum(h2, 0.0)                                   # (B, 256)

    # --- fc3 scalar head: VPU multiply + lane reduction (no MXU) ------------
    out = jnp.sum(h2 * w3r, axis=-1, keepdims=True)             # (B, 1)
    out = out + b3
    out_ref[...] = out.astype(out_ref.dtype)


@jax.jit
def critic_forward(states, actions, params):
    w1, w2, vecs = params
    batch = states.shape[0]
    xs = jnp.concatenate([states, actions], axis=1)             # (B, 32) f32
    input_size = xs.shape[1]

    inputs = (xs, w1, w2, vecs)

    def full_spec(a):
        return pl.BlockSpec(a.shape, lambda: tuple(0 for _ in a.shape))

    weight_bytes = sum(int(a.size) * a.dtype.itemsize for a in (w1, w2, vecs))
    cost = pl.CostEstimate(
        flops=2 * batch * (input_size * FC1_UNITS
                           + FC1_UNITS * FC2_UNITS
                           + FC2_UNITS),
        transcendentals=FC1_UNITS,  # rsqrt per BN feature
        bytes_accessed=weight_bytes + batch * (input_size + 1) * 4,
    )

    return pl.pallas_call(
        critic_kernel,
        out_shape=jax.ShapeDtypeStruct((batch, 1), jnp.float32),
        grid=(),
        in_specs=[full_spec(a) for a in inputs],
        out_specs=pl.BlockSpec((batch, 1), lambda: (0, 0)),
        cost_estimate=cost,
    )(*inputs)


def init_params(key, state_size, action_size,
                fc1_units=FC1_UNITS, fc2_units=FC2_UNITS):
    """Deterministic synthetic init mirroring the PyTorch module's ranges.

    Weights are stored (in_features, out_features); w1/w2 in bf16; all small
    per-feature vectors packed into one (8, fc_units) f32 slab:
        row 0: b1, row 1: gamma, row 2: beta, row 3: b2,
        row 4: fc3 weight (as a row), row 5 col 0: b3, rows 6-7: padding.
    """
    assert fc1_units == fc2_units, "packed-vector layout assumes equal widths"
    input_size = state_size + action_size
    ks = jax.random.split(key, 6)
    lim1 = 1.0 / jnp.sqrt(jnp.float32(fc1_units))   # hidden_init(fc1): 1/sqrt(out)
    lim2 = 1.0 / jnp.sqrt(jnp.float32(fc2_units))   # hidden_init(fc2)

    w1 = jax.random.uniform(ks[0], (input_size, fc1_units), jnp.float32,
                            -lim1, lim1).astype(jnp.bfloat16)
    b1 = jax.random.uniform(ks[1], (fc1_units,), jnp.float32,
                            -1.0 / jnp.sqrt(jnp.float32(input_size)),
                            1.0 / jnp.sqrt(jnp.float32(input_size)))
    w2 = jax.random.uniform(ks[2], (fc1_units, fc2_units), jnp.float32,
                            -lim2, lim2).astype(jnp.bfloat16)
    b2 = jax.random.uniform(ks[3], (fc2_units,), jnp.float32,
                            -1.0 / jnp.sqrt(jnp.float32(fc1_units)),
                            1.0 / jnp.sqrt(jnp.float32(fc1_units)))
    w3r = jax.random.uniform(ks[4], (fc2_units,), jnp.float32, -0.003, 0.003)
    b3 = jax.random.uniform(ks[5], (), jnp.float32,
                            -1.0 / jnp.sqrt(jnp.float32(fc2_units)),
                            1.0 / jnp.sqrt(jnp.float32(fc2_units)))
    gamma = jnp.ones((fc1_units,), jnp.float32)      # BatchNorm1d default affine
    beta = jnp.zeros((fc1_units,), jnp.float32)

    vecs = jnp.zeros((8, fc1_units), jnp.float32)
    vecs = vecs.at[0].set(b1)
    vecs = vecs.at[1].set(gamma)
    vecs = vecs.at[2].set(beta)
    vecs = vecs.at[3].set(b2)
    vecs = vecs.at[4].set(w3r)
    vecs = vecs.at[5, 0].set(b3)
    return (w1, w2, vecs)


def _unpack(params):
    w1, w2, vecs = params
    b1 = vecs[0:1, :]
    gamma = vecs[1:2, :]
    beta = vecs[2:3, :]
    b2 = vecs[3:4, :]
    w3r = vecs[4:5, :]
    b3 = vecs[5:6, 0:1]
    return w1, b1, gamma, beta, w2, b2, w3r, b3


def reference_forward(states, actions, params):
    """Pure-JAX reference replicating the kernel's bf16/f32 mixed precision."""
    w1, b1, gamma, beta, w2, b2, w3r, b3 = _unpack(params)
    xs = jnp.concatenate([states, actions], axis=1).astype(jnp.bfloat16)
    h1 = jnp.dot(xs, w1, preferred_element_type=jnp.float32) + b1
    h1 = jnp.maximum(h1, 0.0)
    mean = jnp.mean(h1, axis=0, keepdims=True)
    var = jnp.maximum(jnp.mean(h1 * h1, axis=0, keepdims=True) - mean * mean, 0.0)
    inv_std = jax.lax.rsqrt(var + BN_EPS)
    scale = inv_std * gamma
    shift = beta - mean * scale
    h1 = h1 * scale + shift
    h2 = jnp.maximum(jnp.dot(h1.astype(jnp.bfloat16), w2,
                             preferred_element_type=jnp.float32) + b2, 0.0)
    return jnp.sum(h2 * w3r, axis=-1, keepdims=True) + b3


def reference_forward_f32(states, actions, params):
    """Full-f32 semantic reference (module math, no bf16 rounding)."""
    w1, b1, gamma, beta, w2, b2, w3r, b3 = _unpack(params)
    xs = jnp.concatenate([states, actions], axis=1)
    h1 = jnp.maximum(xs @ w1.astype(jnp.float32) + b1, 0.0)
    mean = jnp.mean(h1, axis=0, keepdims=True)
    var = jnp.mean((h1 - mean) ** 2, axis=0, keepdims=True)
    h1 = (h1 - mean) / jnp.sqrt(var + BN_EPS) * gamma + beta
    h2 = jnp.maximum(h1 @ w2.astype(jnp.float32) + b2, 0.0)
    return jnp.sum(h2 * w3r, axis=-1, keepdims=True) + b3


if __name__ == "__main__":
    key = jax.random.PRNGKey(0)
    k_params, k_states, k_actions = jax.random.split(key, 3)

    batch = 8
    state_size = 24
    action_size = 8

    params = init_params(k_params, state_size, action_size)
    states = jax.random.normal(k_states, (batch, state_size), jnp.float32)
    actions = jax.random.normal(k_actions, (batch, action_size), jnp.float32)

    out = critic_forward(states, actions, params)
    jax.block_until_ready(out)
    assert out.shape == (batch, 1)

    # Tight check against a reference using identical precision handling.
    ref = reference_forward(states, actions, params)
    assert jnp.allclose(out, ref, atol=1e-4, rtol=1e-4), (out, ref)

    # Loose check against the full-f32 module semantics (bf16 weight rounding).
    ref32 = reference_forward_f32(states, actions, params)
    assert jnp.allclose(out, ref32, atol=5e-2, rtol=5e-2), (out, ref32)

    print("KERNEL_OK")
</pallas_src>

<mosaic_0001>
module attributes {stable_mosaic.version = 11 : i64} {
  func.func @critic_kernel(%arg0: memref<8x32xf32, #tpu.memory_space<vmem>>, %arg1: memref<32x256xbf16, #tpu.memory_space<vmem>>, %arg2: memref<256x256xbf16, #tpu.memory_space<vmem>>, %arg3: memref<8x256xf32, #tpu.memory_space<vmem>>, %arg4: memref<8x1xf32, #tpu.memory_space<vmem>>) attributes {dimension_semantics = [], scalar_prefetch = 0 : i64, scratch_operands = 0 : i64, tpu.core_type = #tpu.core_type<tc>} {
    %c0 = arith.constant 0 : index
    %c0_0 = arith.constant 0 : index
    %0 = vector.load %arg3[%c0, %c0_0] : memref<8x256xf32, #tpu.memory_space<vmem>>, vector<1x256xf32>
    %c1 = arith.constant 1 : index
    %c0_1 = arith.constant 0 : index
    %1 = vector.load %arg3[%c1, %c0_1] : memref<8x256xf32, #tpu.memory_space<vmem>>, vector<1x256xf32>
    %c2 = arith.constant 2 : index
    %c0_2 = arith.constant 0 : index
    %2 = vector.load %arg3[%c2, %c0_2] : memref<8x256xf32, #tpu.memory_space<vmem>>, vector<1x256xf32>
    %c3 = arith.constant 3 : index
    %c0_3 = arith.constant 0 : index
    %3 = vector.load %arg3[%c3, %c0_3] : memref<8x256xf32, #tpu.memory_space<vmem>>, vector<1x256xf32>
    %c4 = arith.constant 4 : index
    %c0_4 = arith.constant 0 : index
    %4 = vector.load %arg3[%c4, %c0_4] : memref<8x256xf32, #tpu.memory_space<vmem>>, vector<1x256xf32>
    %c5 = arith.constant 5 : index
    %c0_5 = arith.constant 0 : index
    %5 = vector.load %arg3[%c5, %c0_5] : memref<8x256xf32, #tpu.memory_space<vmem>>, vector<1x1xf32>
    %c0_6 = arith.constant 0 : index
    %c0_7 = arith.constant 0 : index
    %6 = vector.load %arg0[%c0_6, %c0_7] : memref<8x32xf32, #tpu.memory_space<vmem>>, vector<8x32xf32>
    %7 = arith.truncf %6 : vector<8x32xf32> to vector<8x32xbf16>
    %c0_8 = arith.constant 0 : index
    %c0_9 = arith.constant 0 : index
    %8 = vector.load %arg1[%c0_8, %c0_9] : memref<32x256xbf16, #tpu.memory_space<vmem>>, vector<32x256xbf16>
    %cst = arith.constant dense<0.000000e+00> : vector<8x256xf32>
    %9 = tpu.matmul %7, %8, %cst {dimension_numbers = #tpu.dot_dimension_numbers<[1], [0], [0], [1], [0, 0, 1, 1], [], []>} : vector<8x32xbf16>, vector<32x256xbf16>, vector<8x256xf32> -> vector<8x256xf32>
    %10 = vector.broadcast %0 : vector<1x256xf32> to vector<8x256xf32>
    %11 = arith.addf %9, %10 : vector<8x256xf32>
    %cst_10 = arith.constant 0.000000e+00 : f32
    %12 = vector.broadcast %cst_10 : f32 to vector<8x256xf32>
    %13 = arith.maximumf %11, %12 : vector<8x256xf32>
    %cst_11 = arith.constant dense<0.000000e+00> : vector<256xf32>
    %14 = vector.multi_reduction <add>, %13, %cst_11 [0] : vector<8x256xf32> to vector<256xf32>
    %15 = vector.shape_cast %14 : vector<256xf32> to vector<1x256xf32>
    %cst_12 = arith.constant 8.000000e+00 : f32
    %16 = vector.broadcast %cst_12 : f32 to vector<1x256xf32>
    %17 = arith.divf %15, %16 : vector<1x256xf32>
    %18 = arith.mulf %13, %13 : vector<8x256xf32>
    %cst_13 = arith.constant dense<0.000000e+00> : vector<256xf32>
    %19 = vector.multi_reduction <add>, %18, %cst_13 [0] : vector<8x256xf32> to vector<256xf32>
    %20 = vector.shape_cast %19 : vector<256xf32> to vector<1x256xf32>
    %cst_14 = arith.constant 8.000000e+00 : f32
    %21 = vector.broadcast %cst_14 : f32 to vector<1x256xf32>
    %22 = arith.divf %20, %21 : vector<1x256xf32>
    %23 = arith.mulf %17, %17 : vector<1x256xf32>
    %24 = arith.subf %22, %23 : vector<1x256xf32>
    %cst_15 = arith.constant 0.000000e+00 : f32
    %25 = vector.broadcast %cst_15 : f32 to vector<1x256xf32>
    %26 = arith.maximumf %24, %25 : vector<1x256xf32>
    %cst_16 = arith.constant 9.99999974E-6 : f32
    %27 = vector.broadcast %cst_16 : f32 to vector<1x256xf32>
    %28 = arith.addf %26, %27 : vector<1x256xf32>
    %29 = math.rsqrt %28 : vector<1x256xf32>
    %30 = arith.mulf %29, %1 : vector<1x256xf32>
    %31 = arith.mulf %17, %30 : vector<1x256xf32>
    %32 = arith.subf %2, %31 : vector<1x256xf32>
    %33 = vector.broadcast %30 : vector<1x256xf32> to vector<8x256xf32>
    %34 = arith.mulf %13, %33 : vector<8x256xf32>
    %35 = vector.broadcast %32 : vector<1x256xf32> to vector<8x256xf32>
    %36 = arith.addf %34, %35 : vector<8x256xf32>
    %37 = arith.truncf %36 : vector<8x256xf32> to vector<8x256xbf16>
    %c0_17 = arith.constant 0 : index
    %c0_18 = arith.constant 0 : index
    %38 = vector.load %arg2[%c0_17, %c0_18] : memref<256x256xbf16, #tpu.memory_space<vmem>>, vector<256x256xbf16>
    %cst_19 = arith.constant dense<0.000000e+00> : vector<8x256xf32>
    %39 = tpu.matmul %37, %38, %cst_19 {dimension_numbers = #tpu.dot_dimension_numbers<[1], [0], [0], [1], [0, 0, 1, 1], [], []>} : vector<8x256xbf16>, vector<256x256xbf16>, vector<8x256xf32> -> vector<8x256xf32>
    %40 = vector.broadcast %3 : vector<1x256xf32> to vector<8x256xf32>
    %41 = arith.addf %39, %40 : vector<8x256xf32>
    %cst_20 = arith.constant 0.000000e+00 : f32
    %42 = vector.broadcast %cst_20 : f32 to vector<8x256xf32>
    %43 = arith.maximumf %41, %42 : vector<8x256xf32>
    %44 = vector.broadcast %4 : vector<1x256xf32> to vector<8x256xf32>
    %45 = arith.mulf %43, %44 : vector<8x256xf32>
    %cst_21 = arith.constant dense<0.000000e+00> : vector<8xf32>
    %46 = vector.multi_reduction <add>, %45, %cst_21 [1] : vector<8x256xf32> to vector<8xf32>
    %47 = vector.shape_cast %46 : vector<8xf32> to vector<8x1xf32>
    %48 = vector.broadcast %5 : vector<1x1xf32> to vector<8x1xf32>
    %49 = arith.addf %47, %48 : vector<8x1xf32>
    %c0_22 = arith.constant 0 : index
    %c0_23 = arith.constant 0 : index
    %50 = vector.load %arg4[%c0_22, %c0_23] : memref<8x1xf32, #tpu.memory_space<vmem>>, vector<8x1xf32>
    tpu.vector_store %arg4[%c0_22, %c0_23], %49 {strides = array<i32>} : memref<8x1xf32, #tpu.memory_space<vmem>>, vector<8x1xf32>,
    return
  }
}

</mosaic_0001>

<bundles_post_ra>
// kernel: critic_forward.1
= control target key start
LH: loop header
LB: loop body
LE: loop exit
PB: predicated region body
PF: predicated region fallthrough
CT: control target
= control target key end

     0   :  { %9 = vsyncpa [#allocation3], 0  ;;  %s771_s0 = inlined_call_operand.vmem [shape: f32[8,32], index: 0, kind: input, shape index: {}]   ;;  %s772_s1 = inlined_call_operand.hbm [shape: bf16[32,256], index: 1, kind: input, shape index: {}]   ;;  %s773_s2 = inlined_call_operand.hbm [shape: bf16[256,256], index: 2, kind: input, shape index: {}]   ;;  %s774_s3 = inlined_call_operand.vmem [shape: f32[8,256], index: 3, kind: input, shape index: {}]   ;;  %s775_s4 = inlined_call_operand.vmem [shape: f32[8,1], index: 4, kind: output, shape index: {}]  }
   0x1   :  { %10 = vsyncpa [#allocation5], 0  ;;  %s664_s15 = smov [#allocation2]   ;;  %s616_s19 = scalar_lea.hbm %s772_s1, 512 }
   0x2   :  { %s18_s16 = sshll.u32 %s664_s15, 4  ;;  %p617_p0 = scmp.ne.s32.totalorder %s772_s1, %s616_s19  ;;  %s19_s16 = int_to_ptr.vmem [resolvable:$true] %s18_s16 }
   0x3   :  { %p620_p1 = scmp.lt.u32.totalorder %s616_s19, %s772_s1 }
   0x5   :  { %p622_p2 = pnand %p620_p1, %p617_p0 }
   0x7   :  { %625 = shalt.err (!%p622_p2)
}
   0x8   :  { %s626_s24 = scalar_lea.vmem %s19_s16, 512  ;;  %p631_p4 = scmp.lt.s32.totalorder %s19_s16, %s19_s16 }
   0x9   :  { %p627_p3 = scmp.ne.s32.totalorder %s19_s16, %s626_s24  ;;  %p632_p5 = scmp.lt.s32.totalorder %s626_s24, %s626_s24 }
   0xb   :  { %p633_p6 = por %p632_p5, %p631_p4 }
   0xd   :  { %p634_p7 = pnand %p633_p6, %p627_p3 }
   0xf   :  { %637 = shalt.err (!%p634_p7)
}
  0x10   :  { %s665_s25 = smov 128   ;;  %s666_s26 = smov 8  }
  0x11   :  { %24 = dma.hbm_to_vmem [thread:$0]  %s772_s1, 512, %s19_s16, [#allocation3], %s665_s25, %s665_s25, %s666_s26  }
  0x12   :  { %s667_s29 = smov [#allocation4]   ;;  %s638_s7 = scalar_lea.hbm %s773_s2, 4096 }
  0x13   :  { %s30_s30 = sshll.u32 %s667_s29, 4  ;;  %p639_p8 = scmp.ne.s32.totalorder %s773_s2, %s638_s7  ;;  %s31_s30 = int_to_ptr.vmem [resolvable:$true] %s30_s30 }
  0x14   :  { %p642_p9 = scmp.lt.u32.totalorder %s638_s7, %s773_s2 }
  0x16   :  { %p644_p10 = pnand %p642_p9, %p639_p8 }
  0x18   :  { %647 = shalt.err (!%p644_p10)
}
  0x19   :  { %s648_s12 = scalar_lea.vmem %s31_s30, 4096  ;;  %p653_p12 = scmp.lt.s32.totalorder %s31_s30, %s31_s30 }
  0x1a   :  { %p649_p11 = scmp.ne.s32.totalorder %s31_s30, %s648_s12  ;;  %p654_p13 = scmp.lt.s32.totalorder %s648_s12, %s648_s12 }
  0x1c   :  { %p655_p0 = por %p654_p13, %p653_p12 }
  0x1e   :  { %p656_p1 = pnand %p655_p0, %p649_p11 }
  0x20   :  { %659 = shalt.err (!%p656_p1)
}
  0x21   :  { %36 = dma.hbm_to_vmem [thread:$0]  %s773_s2, 4096, %s31_s30, [#allocation5], %s665_s25, %s665_s25, %s666_s26  }
  0x22   :  { %660 = dma.done.wait [#allocation3], 512  }
  0x23   :  { %661 = vsyncadd [#allocation3], 4294966784 }
  0x24   :  { %662 = dma.done.wait [#allocation5], 4096  }
  0x25   :  { %663 = vsyncadd [#allocation5], 4294963200  ;;  %v668_v0 = vmov 0   ;;  %v558_v1 = vld [vmem:[#allocation2 + $0x4] ss:$8 sps:$4 sm:$0xff]   ;;  %v56_v5 = vld [vmem:[%s771_s0] sm:$0xff]  ;;  %v63_v39 = vlaneseq }
  0x26   :  { %129 = vmatprep.mubr.bf16.mxu0 %v668_v0  ;;  %v560_v2 = vld [vmem:[#allocation2] ss:$8 sps:$4 sm:$0xff]   ;;  %97 = vmatprep.subr.bf16.mxu0 %v558_v1  ;;  %v561_v3 = vld [vmem:[#allocation2 + $0x14] ss:$8 sps:$4 sm:$0xff]   ;;  %v563_v4 = vld [vmem:[#allocation2 + $0x10] ss:$8 sps:$4 sm:$0xff]   ;;  %v57_v9 = vpack.c.bf16 %v56_v5, %v56_v5 }
  0x27   :  { %98 = vmatpush1.bf16.msra.mxu0 %v560_v2  ;;  %v564_v6 = vld [vmem:[#allocation4 + $0x4] ss:$8 sps:$4 sm:$0xff]   ;;  %v566_v7 = vld [vmem:[#allocation4] ss:$8 sps:$4 sm:$0xff]   ;;  %v567_v8 = vld [vmem:[#allocation4 + $0x14] ss:$8 sps:$4 sm:$0xff]  }
  0x28   :  { %99 = vmatprep.subr.bf16.mxu0 %v561_v3  ;;  %443 = vmatprep.subr.bf16.mxu1 %v564_v6  ;;  %v569_v10 = vld [vmem:[#allocation4 + $0x10] ss:$8 sps:$4 sm:$0xff]   ;;  %vm93_vm0 = vcmask 261120   ;;  %v570_v11 = vld [vmem:[#allocation4 + $0x24] ss:$8 sps:$4 sm:$0xff]   ;;  %v722_v40 = vshrl.u32 %v63_v39, 7 }
  0x29   :  { %444 = vmatpush1.bf16.msra.mxu1 %v566_v7  ;;  %v572_v12 = vld [vmem:[#allocation4 + $0x20] ss:$8 sps:$4 sm:$0xff]   ;;  %v573_v13 = vld [vmem:[#allocation4 + $0x34] ss:$8 sps:$4 sm:$0xff]   ;;  %v575_v14 = vld [vmem:[#allocation4 + $0x30] ss:$8 sps:$4 sm:$0xff]  }
  0x2a   :  { %445 = vmatprep.subr.bf16.mxu1 %v567_v8  ;;  %v576_v15 = vld [vmem:[#allocation4 + $0x44] ss:$8 sps:$4 sm:$0xff]   ;;  %v578_v16 = vld [vmem:[#allocation4 + $0x40] ss:$8 sps:$4 sm:$0xff]   ;;  %v579_v17 = vld [vmem:[#allocation4 + $0x54] ss:$8 sps:$4 sm:$0xff]  }
  0x2b   :  { %100 = vmatpush1.bf16.msra.mxu0 %v563_v4  ;;  %v581_v18 = vld [vmem:[#allocation4 + $0x50] ss:$8 sps:$4 sm:$0xff]   ;;  %v582_v19 = vld [vmem:[#allocation4 + $0x64] ss:$8 sps:$4 sm:$0xff]   ;;  %v584_v20 = vld [vmem:[#allocation4 + $0x60] ss:$8 sps:$4 sm:$0xff]  }
  0x2c   :  { %v585_v21 = vld [vmem:[#allocation4 + $0x74] ss:$8 sps:$4 sm:$0xff]   ;;  %v587_v22 = vld [vmem:[#allocation4 + $0x70] ss:$8 sps:$4 sm:$0xff]   ;;  %v588_v23 = vld [vmem:[#allocation4 + $0x84] ss:$8 sps:$4 sm:$0xff]  }
  0x2d   :  { %446 = vmatpush1.bf16.msra.mxu1 %v569_v10  ;;  %v590_v24 = vld [vmem:[#allocation4 + $0x80] ss:$8 sps:$4 sm:$0xff]   ;;  %v591_v25 = vld [vmem:[#allocation4 + $0x94] ss:$8 sps:$4 sm:$0xff]   ;;  %v593_v26 = vld [vmem:[#allocation4 + $0x90] ss:$8 sps:$4 sm:$0xff]  }
  0x2e   :  { %519 = vmatmul.mubr.msk.bf16.vlgmr.msra.gmra.mrb[0].mxu0 %vm93_vm0, %v57_v9  ;;  %447 = vmatprep.subr.bf16.mxu1 %v570_v11  ;;  %v594_v27 = vld [vmem:[#allocation4 + $0xa4] ss:$8 sps:$4 sm:$0xff]   ;;  %v596_v28 = vld [vmem:[#allocation4 + $0xa0] ss:$8 sps:$4 sm:$0xff]   ;;  %v597_v29 = vld [vmem:[#allocation4 + $0xb4] ss:$8 sps:$4 sm:$0xff]  }
  0x2f   :  { %v599_v30 = vld [vmem:[#allocation4 + $0xb0] ss:$8 sps:$4 sm:$0xff]   ;;  %v600_v31 = vld [vmem:[#allocation4 + $0xc4] ss:$8 sps:$4 sm:$0xff]   ;;  %v602_v32 = vld [vmem:[#allocation4 + $0xc0] ss:$8 sps:$4 sm:$0xff]  }
  0x30   :  { %v603_v33 = vld [vmem:[#allocation4 + $0xd4] ss:$8 sps:$4 sm:$0xff]   ;;  %v605_v34 = vld [vmem:[#allocation4 + $0xd0] ss:$8 sps:$4 sm:$0xff]   ;;  %v606_v35 = vld [vmem:[#allocation4 + $0xe4] ss:$8 sps:$4 sm:$0xff]  }
  0x31   :  { %448 = vmatpush1.bf16.msra.mxu1 %v572_v12  ;;  %v608_v36 = vld [vmem:[#allocation4 + $0xe0] ss:$8 sps:$4 sm:$0xff]   ;;  %v609_v37 = vld [vmem:[#allocation4 + $0xf4] ss:$8 sps:$4 sm:$0xff]   ;;  %v611_v38 = vld [vmem:[#allocation4 + $0xf0] ss:$8 sps:$4 sm:$0xff]  }
  0x32   :  { %449 = vmatprep.subr.bf16.mxu1 %v573_v13  ;;  %v725_v41 = vsub.s32 0, %v722_v40  ;;  %v46_v42 = vld [vmem:[%s774_s3] ss:$8 sm:$0x3]  ;;  %v731_v43 = vsub.s32 1, %v722_v40  ;;  %vm503_vm1 = vcmask 7168  }
  0x34   :  { %v66_v44 = vrot.slane %v46_v42, %v725_v41  ;;  %v70_v45 = vrot.slane %v46_v42, %v731_v43 }
  0x35   :  { %450 = vmatpush1.bf16.msra.mxu1 %v575_v14 }
  0x36   :  { %451 = vmatprep.subr.bf16.mxu1 %v576_v15 }
  0x39   :  { %452 = vmatpush1.bf16.msra.mxu1 %v578_v16 }
  0x3a   :  { %453 = vmatprep.subr.bf16.mxu1 %v579_v17 }
  0x3d   :  { %454 = vmatpush1.bf16.msra.mxu1 %v581_v18 }
  0x3e   :  { %455 = vmatprep.subr.bf16.mxu1 %v582_v19 }
  0x41   :  { %456 = vmatpush1.bf16.msra.mxu1 %v584_v20 }
  0x42   :  { %457 = vmatprep.subr.bf16.mxu1 %v585_v21 }
  0x45   :  { %458 = vmatpush1.bf16.msra.mxu1 %v587_v22 }
  0x46   :  { %459 = vmatprep.subr.bf16.mxu1 %v588_v23 }
  0x49   :  { %460 = vmatpush1.bf16.msra.mxu1 %v590_v24 }
  0x4a   :  { %461 = vmatprep.subr.bf16.mxu1 %v591_v25 }
  0x4d   :  { %462 = vmatpush1.bf16.msra.mxu1 %v593_v26 }
  0x4e   :  { %463 = vmatprep.subr.bf16.mxu1 %v594_v27 }
  0x51   :  { %464 = vmatpush1.bf16.msra.mxu1 %v596_v28  ;;  %v511_v28 = vld [vmem:[%s774_s3 + $0x1] ss:$8 sm:$0x3] }
  0x52   :  { %465 = vmatprep.subr.bf16.mxu1 %v597_v29  ;;  %v669_v29 = vmov 1966171168  }
  0x55   :  { %466 = vmatpush1.bf16.msra.mxu1 %v599_v30  ;;  %v200_v30 = vunpack.c.l.s4 %v669_v29 }
  0x56   :  { %467 = vmatprep.subr.bf16.mxu1 %v600_v31  ;;  %v185_v31 = vrot.slane %v511_v28, %v725_v41 }
  0x59   :  { %468 = vmatpush1.bf16.msra.mxu1 %v602_v32  ;;  %v189_v32 = vrot.slane %v511_v28, %v731_v43 }
  0x5a   :  { %469 = vmatprep.subr.bf16.mxu1 %v603_v33 }
  0x5d   :  { %470 = vmatpush1.bf16.msra.mxu1 %v605_v34  ;;  %v201_v34 = vunpack.c.0.s8 %v200_v30 }
  0x5e   :  { %471 = vmatprep.subr.bf16.mxu1 %v606_v35 }
  0x5f   :  { %v204_v42 = vsub.s32 %v201_v34, %v722_v40 }
  0x61   :  { %472 = vmatpush1.bf16.msra.mxu1 %v608_v36 }
  0x62   :  { %473 = vmatprep.subr.bf16.mxu1 %v609_v37 }
  0x65   :  { %474 = vmatpush1.bf16.msra.mxu1 %v611_v38 }
 0x101   :  { %v131_v46 = vpop.f32.mrb[0].mxu0 }
 0x102   :  { %v132_v47 = vadd.f32 %v131_v46, %v66_v44  ;;  %v133_v48 = vpop.f32.mrb[1].mxu0  ;;  %v512_v46 = vld [vmem:[%s774_s3 + $0x2] ss:$8 sm:$0x3] }
 0x103   :  { %v134_v49 = vadd.f32 %v133_v48, %v70_v45  ;;  %v135_v50 = vpop.f32.mrb[2].mxu0 }
 0x104   :  { %v735_v51 = vmax.f32 %v132_v47, 0.0  ;;  %v136_v52 = vpop.f32.mrb[3].mxu0 }
 0x105   :  { %v139_v53 = vmax.f32 %v134_v49, 0.0 }
 0x106   :  { %v140_v54 = vrot.slane %v735_v51, 4  ;;  %v155_v55 = vmul.f32 %v735_v51, %v735_v51 }
 0x107   :  { %v146_v56 = vrot.slane %v139_v53, 4  ;;  %v156_v57 = vmul.f32 %v139_v53, %v139_v53 }
 0x108   :  { %v141_v58 = vadd.f32 %v140_v54, %v735_v51  ;;  %v157_v59 = vrot.slane %v155_v55, 4 }
 0x109   :  { %v147_v60 = vadd.f32 %v146_v56, %v139_v53  ;;  %v163_v61 = vrot.slane %v156_v57, 4 }
 0x10a   :  { %v142_v62 = vrot.slane %v141_v58, 2  ;;  %v158_v63 = vadd.f32 %v157_v59, %v155_v55 }
 0x10b   :  { %v148_v0 = vrot.slane %v147_v60, 2  ;;  %v164_v1 = vadd.f32 %v163_v61, %v156_v57 }
 0x10c   :  { %v143_v2 = vadd.f32 %v142_v62, %v141_v58  ;;  %v159_v3 = vrot.slane %v158_v63, 2 }
 0x10d   :  { %v149_v4 = vadd.f32 %v148_v0, %v147_v60  ;;  %v165_v5 = vrot.slane %v164_v1, 2  ;;  %v513_v60 = vld [vmem:[%s774_s3 + $0x3] ss:$8 sm:$0x3] }
 0x10e   :  { %v144_v6 = vrot.slane %v143_v2, 1  ;;  %v160_v7 = vadd.f32 %v159_v3, %v158_v63  ;;  %v276_v61 = vrot.slane %v513_v60, %v725_v41 }
 0x10f   :  { %v166_v8 = vadd.f32 %v165_v5, %v164_v1  ;;  %v150_v9 = vrot.slane %v149_v4, 1 }
 0x110   :  { %v145_v10 = vadd.f32 %v144_v6, %v143_v2  ;;  %v161_v11 = vrot.slane %v160_v7, 1 }
 0x111   :  { %v167_v12 = vrot.slane %v166_v8, 1  ;;  %v151_v13 = vadd.f32 %v150_v9, %v149_v4 }
 0x112   :  { %v153_v14 = vmul.f32 0.125, %v145_v10  ;;  %v162_v15 = vadd.f32 %v161_v11, %v160_v7  ;;  %v55_v11 = vld [vmem:[%s774_s3 + $0x5] ss:$0 sm:$0xff] }
 0x113   :  { %v168_v16 = vadd.f32 %v167_v12, %v166_v8  ;;  %v154_v17 = vmul.f32 0.125, %v151_v13 }
 0x114   :  { %v169_v18 = vmul.f32 0.125, %v162_v15  ;;  %v171_v19 = vmul.f32 %v153_v14, %v153_v14 }
 0x115   :  { %v170_v20 = vmul.f32 0.125, %v168_v16  ;;  %v172_v21 = vmul.f32 %v154_v17, %v154_v17 }
 0x116   :  { %v173_v22 = vsub.f32 %v169_v18, %v171_v19 }
 0x117   :  { %v174_v23 = vsub.f32 %v170_v20, %v172_v21 }
 0x118   :  { %v175_v24 = vmax.f32 %v173_v22, 0.0 }
 0x119   :  { %v176_v25 = vmax.f32 %v174_v23, 0.0 }
 0x11a   :  { %v177_v26 = vadd.f32 1e-05, %v175_v24 }
 0x11b   :  { %v178_v27 = vadd.f32 1e-05, %v176_v25 }
 0x11c   :  { %612 = vrsqrt.f32 %v177_v26 }
 0x11d   :  { %614 = vrsqrt.f32 %v178_v27 }
 0x126   :  { %v613_v33 = vpop.eup %612 }
 0x127   :  { %v615_v35 = vpop.eup %614  ;;  %v192_v36 = vmul.f32 %v613_v33, %v185_v31 }
 0x128   :  { %v193_v37 = vmul.f32 %v615_v35, %v189_v32 }
 0x129   :  { %v194_v38 = vmul.f32 %v192_v36, %v153_v14  ;;  %v218_v49 = vrot.slane %v192_v36, %v725_v41 }
 0x12a   :  { %v195_v39 = vmul.f32 %v193_v37, %v154_v17  ;;  %v222_v48 = vrot.slane %v193_v37, %v725_v41 }
 0x12b   :  { %v223_v55 = vmul.f32 %v218_v49, %v735_v51  ;;  %v514_v51 = vld [vmem:[%s774_s3 + $0x4] ss:$8 sm:$0x3] }
 0x12c   :  { %v198_v44 = vcombine.low %v194_v38, %v195_v39  ;;  %v224_v52 = vmul.f32 %v222_v48, %v139_v53  ;;  %v280_v53 = vrot.slane %v513_v60, %v731_v43  ;;  %v490_v1 = vrot.slane %v514_v51, %v725_v41 }
 0x12d   :  { %v494_v4 = vrot.slane %v514_v51, %v731_v43 }
 0x12e   :  { %v205_v45 = vrot.slane %v198_v44, %v204_v42 }
 0x130   :  { %v212_v47 = vrot.slane %v205_v45, %v204_v42 }
 0x132   :  { %v214_v50 = vsub.f32 %v512_v46, %v212_v47 }
 0x134   :  { %v233_v54 = vrot.slane %v214_v50, %v731_v43  ;;  %v229_v56 = vrot.slane %v214_v50, %v725_v41 }
 0x136   :  { %v237_v40 = vadd.f32 %v233_v54, %v224_v52  ;;  %v236_v57 = vadd.f32 %v229_v56, %v223_v55 }
 0x138   :  { %v239_v58 = vpack.c.bf16 %v237_v40, %v237_v40  ;;  %v238_v59 = vpack.c.bf16 %v236_v57, %v236_v57 }
 0x13a   :  { %475 = vmatprep.mubr.bf16.mxu1 %v239_v58 }
 0x13b   :  { %476 = vmatmul.mubr.bf16.vlgmr.msra.gmra.mrb[0].mxu1 %v238_v59 }
 0x20e   :  { %v477_v62 = vpop.f32.mrb[0].mxu1 }
 0x20f   :  { %v478_v63 = vadd.f32 %v477_v62, %v276_v61  ;;  %v479_v0 = vpop.f32.mrb[1].mxu1 }
 0x210   :  { %v480_v2 = vadd.f32 %v479_v0, %v280_v53  ;;  %v481_v3 = vpop.f32.mrb[2].mxu1 }
 0x211   :  { %v484_v5 = vmax.f32 %v478_v63, 0.0  ;;  %v482_v6 = vpop.f32.mrb[3].mxu1 }
 0x212   :  { %v485_v7 = vmax.f32 %v480_v2, 0.0 }
 0x213   :  { %v497_v8 = vmul.f32 %v490_v1, %v484_v5 }
 0x214   :  { %v498_v9 = vmul.f32 %v494_v4, %v485_v7 }
 0x216   :  { %v499_v10 = vadd.f32 %v498_v9, %v497_v8 }
 0x218   :  { %500 = vadd.xlane.f32.xlu0 %v499_v10 }
 0x2a5   :  { %v501_v12 = vpop.xlane.xlu0 %500 }
 0x2a6   :  { %v502_v13 = vadd.f32 %v501_v12, %v55_v11 }
 0x2a8   :  { %504 = vst.msk [vmem:[%s775_s4] sm:$0xff] %vm503_vm1, %v502_v13 }
 0x2a9   :  { %509 = vsyncpa [#allocation3], 1 }
 0x2aa   :  { %510 = vsyncpa [#allocation5], 1 }

</bundles_post_ra>
